<compile_context>
chip_gen: v7x
topology: tpu7x:2x2x1
jax: 0.10.0
libtpu: 0.0.40
codegen_flags: <defaults>
</compile_context>

<pallas_src>
import functools
import math

import jax
import jax.numpy as jnp
from jax.experimental import pallas as pl
from jax.experimental.pallas import tpu as pltpu

_INV_SQRT2 = 0.7071067811865476
_SQRT_2_OVER_PI = 0.7978845608028654
_LANE = 128


def _cdiv(a, b):
    return -(-a // b)


def _round_up(x, n):
    return _cdiv(x, n) * n


def _sublane_pack(dtype):
    """Rows per fully-packed sublane tile: 8 (f32), 16 (bf16), 32 (int8/fp8)."""
    return max(8, 32 // jnp.dtype(dtype).itemsize)


def _vmem_limit_bytes():
    """Generation-aware scoped-VMEM budget (~3/4 of physical, capped)."""
    cap = 64 << 20  # conservative default = v7x per-TensorCore VMEM
    try:
        info = pltpu.get_tpu_info()
        cap = int(getattr(info, "vmem_capacity_bytes", cap)) or cap
    except Exception:
        pass
    return max(32 << 20, min(cap * 3 // 4, 112 << 20))


def _proto_fusion_kernel(x_ref, w1_ref, b1_ref, w2_ref, b2_ref, o_ref, acc_ref,
                         *, approximate_gelu=False):
    # One (M-tile, K-chunk) grid step.
    # x_ref: (TM, 2*D)   w1_ref: (2*D, DK)  b1_ref: (1, DK)
    # w2_ref: (DK, Np)   b2_ref: (1, Np)    o_ref: (TM, Np)   acc_ref: (TM, Np) f32
    k = pl.program_id(1)

    @pl.when(k == 0)
    def _init():
        acc_ref[...] = jnp.zeros_like(acc_ref)

    x = x_ref[...]                                    # native dtype -> MXU
    h = jnp.dot(x, w1_ref[...], preferred_element_type=jnp.float32)
    h = h + b1_ref[...].astype(jnp.float32)           # f32 epilogue
    if approximate_gelu:
        # tanh GELU (EUP slot); numerics differ slightly from torch's exact GELU.
        h = 0.5 * h * (1.0 + jnp.tanh(_SQRT_2_OVER_PI * (h + 0.044715 * h * h * h)))
    else:
        # exact erf-based GELU, matching torch nn.GELU() default semantics
        h = 0.5 * h * (1.0 + jax.lax.erf(h * _INV_SQRT2))
    h = h.astype(w2_ref.dtype)                        # back to native dtype for MXU
    acc_ref[...] += jnp.dot(h, w2_ref[...], preferred_element_type=jnp.float32)

    @pl.when(k == pl.num_programs(1) - 1)
    def _finalize():
        o_ref[...] = (acc_ref[...] + b2_ref[...].astype(jnp.float32)).astype(o_ref.dtype)


def _plan_hidden_chunk(in_dim, d_model, n_pad, itemsize, vmem_limit, max_dk=None):
    """Pick hidden-chunk width DK (multiple of 128).

    DK == padded d_model -> one K step, weights fully VMEM-resident (single-buffered).
    DK <  padded d_model -> weights stream as double-buffered chunks along a K grid
                            axis and accumulate into an f32 scratch.
    """
    d_pad0 = _round_up(d_model, _LANE)
    weight_budget = vmem_limit // 2  # leave the other half for x/out/h/acc tiles
    cands = [d_pad0] + [c for c in (512, 256, 128) if c < d_pad0]
    if max_dk is not None:
        cands = [c for c in cands if c <= max_dk] or [_LANE]
    dk = cands[-1]
    for cand in cands:
        num_k = _cdiv(d_pad0, cand)
        wbuf = 1 if num_k == 1 else 2  # resident weights single-buffered, streamed double
        w_bytes = wbuf * ((in_dim + n_pad) * cand + 8 * (cand + n_pad)) * itemsize
        if w_bytes <= weight_budget:
            dk = cand
            break
    num_k = _cdiv(d_pad0, dk)
    return dk, num_k, dk * num_k


def _choose_tm(m, in_dim, dk, n_pad, num_k, itemsize, vmem_limit, dtype):
    sub = _sublane_pack(dtype)
    wbuf = 1 if num_k == 1 else 2
    w_bytes = wbuf * ((in_dim + n_pad) * dk + 8 * (dk + n_pad)) * itemsize
    budget = max(vmem_limit - w_bytes - (4 << 20), 2 << 20)

    m_rows = max(m, 1)
    tm = min(512, _round_up(m_rows, sub))
    if m_rows > sub:
        # keep >=2 grid steps so the "parallel" M axis can shard across v7x's 2 TCs
        tm = min(tm, _round_up(_cdiv(m_rows, 2), sub))
    tm = max(tm, sub)

    def tile_bytes(t):
        b = 2 * t * in_dim * itemsize   # x tile (double-buffered)
        b += 2 * t * n_pad * itemsize   # out tile (double-buffered)
        b += t * n_pad * 4              # f32 accumulator scratch
        b += t * dk * (4 + itemsize)    # hidden intermediate + dtype cast
        return b

    while tm > sub and tile_bytes(tm) > budget:
        tm = max(sub, _round_up(tm // 2, sub))
    return tm


def _block_spec(shape, index_map, single_buffer):
    if single_buffer:
        try:
            # grid-invariant operand: one resident VMEM copy instead of two
            return pl.BlockSpec(shape, index_map, pipeline_mode=pl.Buffered(1))
        except TypeError:
            pass
    return pl.BlockSpec(shape, index_map)


def _make_call(m, in_dim, n_pad, dk, num_k, tm, dtype, vmem_limit, cost,
               approximate_gelu, single_buffer_weights):
    m_tiles = _cdiv(max(m, 1), tm)
    resident = (num_k == 1) and single_buffer_weights

    grid_spec = pltpu.PrefetchScalarGridSpec(
        num_scalar_prefetch=0,
        grid=(m_tiles, num_k),
        in_specs=[
            pl.BlockSpec((tm, in_dim), lambda i, k: (i, 0)),           # x streams over M
            _block_spec((in_dim, dk), lambda i, k: (0, k), resident),  # W1 chunk
            _block_spec((1, dk), lambda i, k: (0, k), resident),       # b1 chunk
            _block_spec((dk, n_pad), lambda i, k: (k, 0), resident),   # W2 chunk
            _block_spec((1, n_pad), lambda i, k: (0, 0),               # b2: always invariant
                        single_buffer_weights),
        ],
        out_specs=pl.BlockSpec((tm, n_pad), lambda i, k: (i, 0)),
        scratch_shapes=[pltpu.VMEM((tm, n_pad), jnp.float32)],
    )
    return pl.pallas_call(
        functools.partial(_proto_fusion_kernel, approximate_gelu=approximate_gelu),
        out_shape=jax.ShapeDtypeStruct((m, n_pad), dtype),
        grid_spec=grid_spec,
        compiler_params=pltpu.CompilerParams(
            dimension_semantics=("parallel", "arbitrary"),
            vmem_limit_bytes=vmem_limit,
        ),
        cost_estimate=cost,
    )


class ProtoFusion:
    """Fused y = GELU(x @ W1 + b1) @ W2 + b2 (torch: Linear -> GELU -> Linear).

    Weights are padded to lane-dense shapes ONCE at construction (off the hot
    path).  Per call, only x is reshaped; ragged M is handled by cdiv grid +
    masked boundary writes (no x padding / extra HBM traffic).
    """

    def __init__(self, w1, b1, w2, b2, *, max_dk=None, approximate_gelu=False):
        in_dim, d_model = w1.shape
        assert in_dim == 2 * d_model, "ProtoFusion expects Linear(2*d_model, d_model)"
        assert w2.shape[0] == d_model
        out_dim = w2.shape[1]
        dtype = jnp.dtype(w1.dtype)
        itemsize = dtype.itemsize

        self.in_dim, self.d_model, self.out_dim = in_dim, d_model, out_dim
        self.dtype = dtype
        self.approximate_gelu = approximate_gelu
        self.vmem_limit = _vmem_limit_bytes()
        self.n_pad = _round_up(out_dim, _LANE)
        self.dk, self.num_k, self.d_pad = _plan_hidden_chunk(
            in_dim, d_model, self.n_pad, itemsize, self.vmem_limit, max_dk=max_dk)

        dpad, npad = self.d_pad, self.n_pad
        # Zero-padding is mathematically inert: GELU(0)=0, zero W2 rows / b cols.
        self.w1 = jnp.pad(w1, ((0, 0), (0, dpad - d_model)))
        self.b1 = jnp.pad(jnp.reshape(b1, (1, d_model)), ((0, 0), (0, dpad - d_model)))
        self.w2 = jnp.pad(w2, ((0, dpad - d_model), (0, npad - out_dim)))
        self.b2 = jnp.pad(jnp.reshape(b2, (1, out_dim)), ((0, 0), (0, npad - out_dim)))
        # TODO(synk): add an N (output-column) grid axis for out_dim so large that a
        # single (dk, n_pad) W2 block no longer fits in VMEM.

    def __call__(self, x):
        *lead, in_dim = x.shape
        assert in_dim == self.in_dim
        if x.dtype != self.dtype:
            x = x.astype(self.dtype)
        m = math.prod(lead) if lead else 1
        x2 = x.reshape(m, in_dim)
        itemsize = self.dtype.itemsize

        tm = _choose_tm(m, in_dim, self.dk, self.n_pad, self.num_k, itemsize,
                        self.vmem_limit, self.dtype)
        m_tiles = _cdiv(max(m, 1), tm)
        w_nbytes = self.w1.nbytes + self.b1.nbytes + self.w2.nbytes + self.b2.nbytes
        cost = pl.CostEstimate(
            flops=2 * m * (in_dim * self.d_pad + self.d_pad * self.n_pad),
            transcendentals=m * self.d_pad,
            bytes_accessed=int(x2.nbytes + m * self.n_pad * itemsize
                               + (1 if self.num_k == 1 else m_tiles) * w_nbytes),
        )

        def run(single_buffer_weights):
            call = _make_call(m, in_dim, self.n_pad, self.dk, self.num_k, tm,
                              self.dtype, self.vmem_limit, cost,
                              self.approximate_gelu, single_buffer_weights)
            return call(x2, self.w1, self.b1, self.w2, self.b2)

        try:
            out = run(True)
        except Exception:
            # Defensive fallback if Buffered(1) single-buffering is rejected.
            out = run(False)

        out = out[:, :self.out_dim]
        return out.reshape(*lead, self.out_dim)


def init_params(key, d_model, output_dim, dtype=jnp.float32):
    """Deterministic init mimicking torch nn.Linear (uniform +/- 1/sqrt(fan_in))."""
    k1, k2, k3, k4 = jax.random.split(key, 4)
    fan1 = 2 * d_model
    fan2 = d_model
    w1 = jax.random.uniform(k1, (2 * d_model, d_model), dtype,
                            minval=-1.0 / math.sqrt(fan1), maxval=1.0 / math.sqrt(fan1))
    b1 = jax.random.uniform(k2, (1, d_model), dtype,
                            minval=-1.0 / math.sqrt(fan1), maxval=1.0 / math.sqrt(fan1))
    w2 = jax.random.uniform(k3, (d_model, output_dim), dtype,
                            minval=-1.0 / math.sqrt(fan2), maxval=1.0 / math.sqrt(fan2))
    b2 = jax.random.uniform(k4, (1, output_dim), dtype,
                            minval=-1.0 / math.sqrt(fan2), maxval=1.0 / math.sqrt(fan2))
    return w1, b1, w2, b2


def _reference(x, w1, b1, w2, b2):
    hp = jax.lax.Precision.HIGHEST
    h = jnp.tensordot(x, w1, axes=1, precision=hp) + jnp.reshape(b1, (-1,))
    h = 0.5 * h * (1.0 + jax.lax.erf(h * _INV_SQRT2))
    return jnp.tensordot(h, w2, axes=1, precision=hp) + jnp.reshape(b2, (-1,))


if __name__ == "__main__":
    key = jax.random.PRNGKey(0)
    k1, k2, k3, k4 = jax.random.split(key, 4)

    # --- test 1: module-sized shapes, weight-resident (num_k == 1) fast path ---
    d_model, out_dim = 32, 16
    batch, seq = 2, 8
    x = jax.random.normal(k1, (batch, seq, 2 * d_model), dtype=jnp.float32)
    w1, b1, w2, b2 = init_params(k2, d_model, out_dim)
    mod = ProtoFusion(w1, b1, w2, b2)
    y = mod(x)
    jax.block_until_ready(y)
    y_ref = _reference(x, w1, b1, w2, b2)
    assert y.shape == (batch, seq, out_dim)
    assert jnp.allclose(y, y_ref, atol=1e-4, rtol=1e-4), float(jnp.max(jnp.abs(y - y_ref)))

    # --- test 2: forced K-tiled accumulator path + ragged (un-padded) M ---
    d_model2, out_dim2 = 256, 48
    batch2, seq2 = 2, 10
    x2 = jax.random.normal(k3, (batch2, seq2, 2 * d_model2), dtype=jnp.float32)
    p2 = init_params(k4, d_model2, out_dim2)
    mod2 = ProtoFusion(*p2, max_dk=128)   # -> num_k = 2: streaming weights, f32 accumulator
    y2 = mod2(x2)
    jax.block_until_ready(y2)
    y2_ref = _reference(x2, *p2)
    assert y2.shape == (batch2, seq2, out_dim2)
    assert jnp.allclose(y2, y2_ref, atol=2e-4, rtol=2e-4), float(jnp.max(jnp.abs(y2 - y2_ref)))

    print("KERNEL_OK")
</pallas_src>

<mosaic_0001>
module attributes {stable_mosaic.version = 11 : i64} {
  func.func @_proto_fusion_kernel(%arg0: i32, %arg1: i32, %arg2: memref<8x64xf32, #tpu.memory_space<vmem>>, %arg3: memref<64x128xf32, #tpu.memory_space<vmem>>, %arg4: memref<1x128xf32, #tpu.memory_space<vmem>>, %arg5: memref<128x128xf32, #tpu.memory_space<vmem>>, %arg6: memref<1x128xf32, #tpu.memory_space<vmem>>, %arg7: memref<8x128xf32, #tpu.memory_space<vmem>>, %arg8: memref<8x128xf32, #tpu.memory_space<vmem>>) attributes {dimension_semantics = [#tpu.dimension_semantics<parallel>, #tpu.dimension_semantics<arbitrary>], iteration_bounds = array<i64: 2, 1>, scalar_prefetch = 0 : i64, scratch_operands = 1 : i64, tpu.core_type = #tpu.core_type<tc>, window_params = [{transform_indices = @transform_0, window_bounds = array<i64: 8, 64>}, {pipeline_mode = #tpu.pipeline_mode<synchronous>, transform_indices = @transform_1, window_bounds = array<i64: 64, 128>}, {pipeline_mode = #tpu.pipeline_mode<synchronous>, transform_indices = @transform_2, window_bounds = array<i64: 1, 128>}, {pipeline_mode = #tpu.pipeline_mode<synchronous>, transform_indices = @transform_3, window_bounds = array<i64: 128, 128>}, {pipeline_mode = #tpu.pipeline_mode<synchronous>, transform_indices = @transform_4, window_bounds = array<i64: 1, 128>}, {transform_indices = @transform_5, window_bounds = array<i64: 8, 128>}]} {
    %c0_i32 = arith.constant 0 : i32
    %0 = arith.cmpi eq, %arg1, %c0_i32 : i32
    %1 = arith.extui %0 : i1 to i32
    %c0_i32_0 = arith.constant 0 : i32
    %2 = arith.cmpi ne, %1, %c0_i32_0 : i32
    scf.if %2 {
      %cst_18 = arith.constant 0.000000e+00 : f32
      %25 = vector.broadcast %cst_18 : f32 to vector<8x128xf32>
      %c0_19 = arith.constant 0 : index
      %c0_20 = arith.constant 0 : index
      %26 = vector.load %arg8[%c0_19, %c0_20] : memref<8x128xf32, #tpu.memory_space<vmem>>, vector<8x128xf32>
      tpu.vector_store %arg8[%c0_19, %c0_20], %25 {strides = array<i32>} : memref<8x128xf32, #tpu.memory_space<vmem>>, vector<8x128xf32>,
    } else {
    }
    %c0 = arith.constant 0 : index
    %c0_1 = arith.constant 0 : index
    %3 = vector.load %arg2[%c0, %c0_1] : memref<8x64xf32, #tpu.memory_space<vmem>>, vector<8x64xf32>
    %c0_2 = arith.constant 0 : index
    %c0_3 = arith.constant 0 : index
    %4 = vector.load %arg3[%c0_2, %c0_3] : memref<64x128xf32, #tpu.memory_space<vmem>>, vector<64x128xf32>
    %cst = arith.constant dense<0.000000e+00> : vector<8x128xf32>
    %5 = tpu.matmul %3, %4, %cst {dimension_numbers = #tpu.dot_dimension_numbers<[1], [0], [0], [1], [0, 0, 1, 1], [], []>} : vector<8x64xf32>, vector<64x128xf32>, vector<8x128xf32> -> vector<8x128xf32>
    %c0_4 = arith.constant 0 : index
    %c0_5 = arith.constant 0 : index
    %6 = vector.load %arg4[%c0_4, %c0_5] : memref<1x128xf32, #tpu.memory_space<vmem>>, vector<1x128xf32>
    %7 = vector.broadcast %6 : vector<1x128xf32> to vector<8x128xf32>
    %8 = arith.addf %5, %7 : vector<8x128xf32>
    %cst_6 = arith.constant 5.000000e-01 : f32
    %9 = vector.broadcast %cst_6 : f32 to vector<8x128xf32>
    %10 = arith.mulf %9, %8 : vector<8x128xf32>
    %cst_7 = arith.constant 0.707106769 : f32
    %11 = vector.broadcast %cst_7 : f32 to vector<8x128xf32>
    %12 = arith.mulf %8, %11 : vector<8x128xf32>
    %13 = math.erf %12 : vector<8x128xf32>
    %cst_8 = arith.constant 1.000000e+00 : f32
    %14 = vector.broadcast %cst_8 : f32 to vector<8x128xf32>
    %15 = arith.addf %14, %13 : vector<8x128xf32>
    %16 = arith.mulf %10, %15 : vector<8x128xf32>
    %c0_9 = arith.constant 0 : index
    %c0_10 = arith.constant 0 : index
    %17 = vector.load %arg8[%c0_9, %c0_10] : memref<8x128xf32, #tpu.memory_space<vmem>>, vector<8x128xf32>
    %c0_11 = arith.constant 0 : index
    %c0_12 = arith.constant 0 : index
    %18 = vector.load %arg5[%c0_11, %c0_12] : memref<128x128xf32, #tpu.memory_space<vmem>>, vector<128x128xf32>
    %cst_13 = arith.constant dense<0.000000e+00> : vector<8x128xf32>
    %19 = tpu.matmul %16, %18, %cst_13 {dimension_numbers = #tpu.dot_dimension_numbers<[1], [0], [0], [1], [0, 0, 1, 1], [], []>} : vector<8x128xf32>, vector<128x128xf32>, vector<8x128xf32> -> vector<8x128xf32>
    %20 = arith.addf %17, %19 : vector<8x128xf32>
    %c0_14 = arith.constant 0 : index
    %c0_15 = arith.constant 0 : index
    %21 = vector.load %arg8[%c0_14, %c0_15] : memref<8x128xf32, #tpu.memory_space<vmem>>, vector<8x128xf32>
    tpu.vector_store %arg8[%c0_14, %c0_15], %20 {strides = array<i32>} : memref<8x128xf32, #tpu.memory_space<vmem>>, vector<8x128xf32>,
    %c0_i32_16 = arith.constant 0 : i32
    %22 = arith.cmpi eq, %arg1, %c0_i32_16 : i32
    %23 = arith.extui %22 : i1 to i32
    %c0_i32_17 = arith.constant 0 : i32
    %24 = arith.cmpi ne, %23, %c0_i32_17 : i32
    scf.if %24 {
      %c0_18 = arith.constant 0 : index
      %c0_19 = arith.constant 0 : index
      %25 = vector.load %arg8[%c0_18, %c0_19] : memref<8x128xf32, #tpu.memory_space<vmem>>, vector<8x128xf32>
      %c0_20 = arith.constant 0 : index
      %c0_21 = arith.constant 0 : index
      %26 = vector.load %arg6[%c0_20, %c0_21] : memref<1x128xf32, #tpu.memory_space<vmem>>, vector<1x128xf32>
      %27 = vector.broadcast %26 : vector<1x128xf32> to vector<8x128xf32>
      %28 = arith.addf %25, %27 : vector<8x128xf32>
      %c0_22 = arith.constant 0 : index
      %c0_23 = arith.constant 0 : index
      %29 = vector.load %arg7[%c0_22, %c0_23] : memref<8x128xf32, #tpu.memory_space<vmem>>, vector<8x128xf32>
      tpu.vector_store %arg7[%c0_22, %c0_23], %28 {strides = array<i32>} : memref<8x128xf32, #tpu.memory_space<vmem>>, vector<8x128xf32>,
    } else {
    }
    return
  }
  func.func @transform_0(%arg0: i32, %arg1: i32) -> (i32, i32) {
    %c0_i32 = arith.constant 0 : i32
    %c0_i32_0 = arith.constant 0 : i32
    return %arg0, %c0_i32 : i32, i32
  }
  func.func @transform_1(%arg0: i32, %arg1: i32) -> (i32, i32) {
    %c0_i32 = arith.constant 0 : i32
    %c0_i32_0 = arith.constant 0 : i32
    return %c0_i32, %arg1 : i32, i32
  }
  func.func @transform_2(%arg0: i32, %arg1: i32) -> (i32, i32) {
    %c0_i32 = arith.constant 0 : i32
    %c0_i32_0 = arith.constant 0 : i32
    return %c0_i32, %arg1 : i32, i32
  }
  func.func @transform_3(%arg0: i32, %arg1: i32) -> (i32, i32) {
    %c0_i32 = arith.constant 0 : i32
    %c0_i32_0 = arith.constant 0 : i32
    return %arg1, %c0_i32 : i32, i32
  }
  func.func @transform_4(%arg0: i32, %arg1: i32) -> (i32, i32) {
    %c0_i32 = arith.constant 0 : i32
    %c0_i32_0 = arith.constant 0 : i32
    %c0_i32_1 = arith.constant 0 : i32
    return %c0_i32, %c0_i32_0 : i32, i32
  }
  func.func @transform_5(%arg0: i32, %arg1: i32) -> (i32, i32) {
    %c0_i32 = arith.constant 0 : i32
    %c0_i32_0 = arith.constant 0 : i32
    return %arg0, %c0_i32 : i32, i32
  }
}

module attributes {stable_mosaic.version = 11 : i64} {
  func.func @_proto_fusion_kernel(%arg0: i32, %arg1: i32, %arg2: memref<8x64xf32, #tpu.memory_space<vmem>>, %arg3: memref<64x128xf32, #tpu.memory_space<vmem>>, %arg4: memref<1x128xf32, #tpu.memory_space<vmem>>, %arg5: memref<128x128xf32, #tpu.memory_space<vmem>>, %arg6: memref<1x128xf32, #tpu.memory_space<vmem>>, %arg7: memref<8x128xf32, #tpu.memory_space<vmem>>, %arg8: memref<8x128xf32, #tpu.memory_space<vmem>>) attributes {dimension_semantics = [#tpu.dimension_semantics<parallel>, #tpu.dimension_semantics<arbitrary>], iteration_bounds = array<i64: 2, 1>, scalar_prefetch = 0 : i64, scratch_operands = 1 : i64, tpu.core_type = #tpu.core_type<tc>, window_params = [{transform_indices = @transform_0, window_bounds = array<i64: 8, 64>}, {transform_indices = @transform_1, window_bounds = array<i64: 64, 128>}, {transform_indices = @transform_2, window_bounds = array<i64: 1, 128>}, {transform_indices = @transform_3, window_bounds = array<i64: 128, 128>}, {pipeline_mode = #tpu.pipeline_mode<synchronous>, transform_indices = @transform_4, window_bounds = array<i64: 1, 128>}, {transform_indices = @transform_5, window_bounds = array<i64: 8, 128>}]} {
    %c0_i32 = arith.constant 0 : i32
    %0 = arith.cmpi eq, %arg1, %c0_i32 : i32
    %1 = arith.extui %0 : i1 to i32
    %c0_i32_0 = arith.constant 0 : i32
    %2 = arith.cmpi ne, %1, %c0_i32_0 : i32
    scf.if %2 {
      %cst_18 = arith.constant 0.000000e+00 : f32
      %25 = vector.broadcast %cst_18 : f32 to vector<8x128xf32>
      %c0_19 = arith.constant 0 : index
      %c0_20 = arith.constant 0 : index
      %26 = vector.load %arg8[%c0_19, %c0_20] : memref<8x128xf32, #tpu.memory_space<vmem>>, vector<8x128xf32>
      tpu.vector_store %arg8[%c0_19, %c0_20], %25 {strides = array<i32>} : memref<8x128xf32, #tpu.memory_space<vmem>>, vector<8x128xf32>,
    } else {
    }
    %c0 = arith.constant 0 : index
    %c0_1 = arith.constant 0 : index
    %3 = vector.load %arg2[%c0, %c0_1] : memref<8x64xf32, #tpu.memory_space<vmem>>, vector<8x64xf32>
    %c0_2 = arith.constant 0 : index
    %c0_3 = arith.constant 0 : index
    %4 = vector.load %arg3[%c0_2, %c0_3] : memref<64x128xf32, #tpu.memory_space<vmem>>, vector<64x128xf32>
    %cst = arith.constant dense<0.000000e+00> : vector<8x128xf32>
    %5 = tpu.matmul %3, %4, %cst {dimension_numbers = #tpu.dot_dimension_numbers<[1], [0], [0], [1], [0, 0, 1, 1], [], []>} : vector<8x64xf32>, vector<64x128xf32>, vector<8x128xf32> -> vector<8x128xf32>
    %c0_4 = arith.constant 0 : index
    %c0_5 = arith.constant 0 : index
    %6 = vector.load %arg4[%c0_4, %c0_5] : memref<1x128xf32, #tpu.memory_space<vmem>>, vector<1x128xf32>
    %7 = vector.broadcast %6 : vector<1x128xf32> to vector<8x128xf32>
    %8 = arith.addf %5, %7 : vector<8x128xf32>
    %cst_6 = arith.constant 5.000000e-01 : f32
    %9 = vector.broadcast %cst_6 : f32 to vector<8x128xf32>
    %10 = arith.mulf %9, %8 : vector<8x128xf32>
    %cst_7 = arith.constant 0.707106769 : f32
    %11 = vector.broadcast %cst_7 : f32 to vector<8x128xf32>
    %12 = arith.mulf %8, %11 : vector<8x128xf32>
    %13 = math.erf %12 : vector<8x128xf32>
    %cst_8 = arith.constant 1.000000e+00 : f32
    %14 = vector.broadcast %cst_8 : f32 to vector<8x128xf32>
    %15 = arith.addf %14, %13 : vector<8x128xf32>
    %16 = arith.mulf %10, %15 : vector<8x128xf32>
    %c0_9 = arith.constant 0 : index
    %c0_10 = arith.constant 0 : index
    %17 = vector.load %arg8[%c0_9, %c0_10] : memref<8x128xf32, #tpu.memory_space<vmem>>, vector<8x128xf32>
    %c0_11 = arith.constant 0 : index
    %c0_12 = arith.constant 0 : index
    %18 = vector.load %arg5[%c0_11, %c0_12] : memref<128x128xf32, #tpu.memory_space<vmem>>, vector<128x128xf32>
    %cst_13 = arith.constant dense<0.000000e+00> : vector<8x128xf32>
    %19 = tpu.matmul %16, %18, %cst_13 {dimension_numbers = #tpu.dot_dimension_numbers<[1], [0], [0], [1], [0, 0, 1, 1], [], []>} : vector<8x128xf32>, vector<128x128xf32>, vector<8x128xf32> -> vector<8x128xf32>
    %20 = arith.addf %17, %19 : vector<8x128xf32>
    %c0_14 = arith.constant 0 : index
    %c0_15 = arith.constant 0 : index
    %21 = vector.load %arg8[%c0_14, %c0_15] : memref<8x128xf32, #tpu.memory_space<vmem>>, vector<8x128xf32>
    tpu.vector_store %arg8[%c0_14, %c0_15], %20 {strides = array<i32>} : memref<8x128xf32, #tpu.memory_space<vmem>>, vector<8x128xf32>,
    %c0_i32_16 = arith.constant 0 : i32
    %22 = arith.cmpi eq, %arg1, %c0_i32_16 : i32
    %23 = arith.extui %22 : i1 to i32
    %c0_i32_17 = arith.constant 0 : i32
    %24 = arith.cmpi ne, %23, %c0_i32_17 : i32
    scf.if %24 {
      %c0_18 = arith.constant 0 : index
      %c0_19 = arith.constant 0 : index
      %25 = vector.load %arg8[%c0_18, %c0_19] : memref<8x128xf32, #tpu.memory_space<vmem>>, vector<8x128xf32>
      %c0_20 = arith.constant 0 : index
      %c0_21 = arith.constant 0 : index
      %26 = vector.load %arg6[%c0_20, %c0_21] : memref<1x128xf32, #tpu.memory_space<vmem>>, vector<1x128xf32>
      %27 = vector.broadcast %26 : vector<1x128xf32> to vector<8x128xf32>
      %28 = arith.addf %25, %27 : vector<8x128xf32>
      %c0_22 = arith.constant 0 : index
      %c0_23 = arith.constant 0 : index
      %29 = vector.load %arg7[%c0_22, %c0_23] : memref<8x128xf32, #tpu.memory_space<vmem>>, vector<8x128xf32>
      tpu.vector_store %arg7[%c0_22, %c0_23], %28 {strides = array<i32>} : memref<8x128xf32, #tpu.memory_space<vmem>>, vector<8x128xf32>,
    } else {
    }
    return
  }
  func.func @transform_0(%arg0: i32, %arg1: i32) -> (i32, i32) {
    %c0_i32 = arith.constant 0 : i32
    %c0_i32_0 = arith.constant 0 : i32
    return %arg0, %c0_i32 : i32, i32
  }
  func.func @transform_1(%arg0: i32, %arg1: i32) -> (i32, i32) {
    %c0_i32 = arith.constant 0 : i32
    %c0_i32_0 = arith.constant 0 : i32
    return %c0_i32, %arg1 : i32, i32
  }
  func.func @transform_2(%arg0: i32, %arg1: i32) -> (i32, i32) {
    %c0_i32 = arith.constant 0 : i32
    %c0_i32_0 = arith.constant 0 : i32
    return %c0_i32, %arg1 : i32, i32
  }
  func.func @transform_3(%arg0: i32, %arg1: i32) -> (i32, i32) {
    %c0_i32 = arith.constant 0 : i32
    %c0_i32_0 = arith.constant 0 : i32
    return %arg1, %c0_i32 : i32, i32
  }
  func.func @transform_4(%arg0: i32, %arg1: i32) -> (i32, i32) {
    %c0_i32 = arith.constant 0 : i32
    %c0_i32_0 = arith.constant 0 : i32
    %c0_i32_1 = arith.constant 0 : i32
    return %c0_i32, %c0_i32_0 : i32, i32
  }
  func.func @transform_5(%arg0: i32, %arg1: i32) -> (i32, i32) {
    %c0_i32 = arith.constant 0 : i32
    %c0_i32_0 = arith.constant 0 : i32
    return %arg0, %c0_i32 : i32, i32
  }
}

</mosaic_0001>

<bundles_post_ra>
// kernel: tpu_custom_call.1
= control target key start
LH: loop header
LB: loop body
LE: loop exit
PB: predicated region body
PF: predicated region fallthrough
CT: control target
= control target key end

     0   :  { %10 = vsyncpa [#allocation4], 0  ;;  %s1343_s0 = inlined_call_operand.hbm [shape: f32[16,64], index: 0, kind: input, shape index: {}]   ;;  %s1344_s1 = inlined_call_operand.hbm [shape: f32[64,128], index: 1, kind: input, shape index: {}]   ;;  %s1345_s2 = inlined_call_operand.vmem [shape: f32[1,128], index: 2, kind: input, shape index: {}]   ;;  %s1346_s3 = inlined_call_operand.hbm [shape: f32[128,128], index: 3, kind: input, shape index: {}]   ;;  %s1347_s4 = inlined_call_operand.vmem [shape: f32[1,128], index: 4, kind: input, shape index: {}]   ;;  %s1348_s5 = inlined_call_operand.hbm [shape: f32[16,128], index: 5, kind: output, shape index: {}]  }
   0x1   :  { %12 = vsyncpa [#allocation4 + $0x1], 0 }
   0x2   :  { %13 = vsyncpa [#allocation7], 0 }
   0x3   :  { %14 = vsyncpa [#allocation5], 0 }
   0x4   :  { %16 = vsyncpa [#allocation5 + $0x1], 0  ;;  %s1080_s18 = smov 0   ;;  %s1082_s19 = smov 0  }
   0x5   :  { %s1084_s20 = smov 0   ;;  %s1086_s21 = smov 0  }
   0x6   :  { %s1088_s22 = smov 0   ;;  %s1090_s23 = smov 0  }
   0x7 LB: > { %s640_s24 = sadd.s32 4294967295, %s1039_s23   ;;  %s641_s25 = sadd.s32 4294967294, %s1039_s23   ;;  %s1039_s23 = sphi %s1090_s23, %s22_s23   ;;  %s1035_s22 = sphi %s1088_s22, %s1370_s22   ;;  %s1031_s21 = sphi %s1086_s21, %s1369_s21   ;;  %s1027_s20 = sphi %s1084_s20, %s1368_s20   ;;  %s1023_s19 = sphi %s1082_s19, %s1367_s19   ;;  %s1019_s18 = sphi %s1080_s18, %s1366_s18  }
   0x8   : > { %p54_p0 = scmp.ne.s32.totalorder %s1023_s19, %s1019_s18  ;;  %p1114_p1 = scmp.eq.s32.totalorder %s640_s24, 0 }
   0x9   : > { %p1118_p2 = scmp.eq.s32.totalorder %s640_s24, 1  ;;  %p183_p3 = scmp.eq.s32.totalorder %s641_s25, 1 }
   0xa   : > { %s1353_s26 = scalar_select %p1114_p1, 1, 0 }
   0xb   : > { %p1124_p4 = por %p1114_p1, %p54_p0  ;;  %p642_p5 = scmp.ge.s32.totalorder %s1039_s23, 1 }
   0xc   : > { %p1129_p6 = por %p183_p3, %p54_p0  ;;  %p190_p7 = scmp.lt.s32.totalorder %s1039_s23, 3 }
   0xd   : > { %s1355_s28 = scalar_select %p1124_p4, 1, 0 }
   0xe   : > { %s1356_s29 = scalar_select %p1129_p6, 1, 0 }
   0xf   : > { %p1134_p8 = pnand %p642_p5, %p190_p7  ;;  %s1041_s6 = smov [#allocation6]  }
  0x10   : > { %s204_s7 = sshll.u32 %s1041_s6, 4  ;;  %s1042_s9 = smov [#allocation8]   ;;  %s1138_s7 = int_to_ptr.vmem [resolvable:$true] %s204_s7 }
  0x11   : > { %p789_p9 = pneg %p1134_p8  ;;  %s226_s10 = sshll.u32 %s1042_s9, 4  ;;  %s1149_s10 = int_to_ptr.vmem [resolvable:$true] %s226_s10 }
  0x12   : > { %s867_s13 = scalar_lea.hbm %s1344_s1, 1024 }
  0x13   : > { %p1145_p11 = pnand %p789_p9, %p1114_p1  ;;  %p868_p12 = scmp.ne.s32.totalorder %s1344_s1, %s867_s13 }
  0x14   : > { %p874_p5 = scmp.lt.u32.totalorder %s867_s13, %s1344_s1 }
  0x15   : > { %p869_p13 = pneg %p1145_p11 }
  0x17   : > { %p870_p0 = pnand %p869_p13, %p868_p12 }
  0x19   : > { %p871_p3 = pneg %p870_p0 }
  0x1b   : > { %p876_p7 = pnand %p874_p5, %p871_p3 }
  0x1d   : > { %879 = shalt.err (!%p876_p7)
}
  0x1e   : > { %s880_s24 = scalar_lea.vmem %s1138_s7, 1024  ;;  %p888_p1 = scmp.lt.s32.totalorder %s1138_s7, %s1138_s7 }
  0x1f   : > { %p881_p9 = scmp.ne.s32.totalorder %s1138_s7, %s880_s24  ;;  %p889_p12 = scmp.lt.s32.totalorder %s880_s24, %s880_s24 }
  0x21   : > { %p883_p10 = pnand %p881_p9, %p869_p13  ;;  %p890_p0 = por %p889_p12, %p888_p1 }
  0x23   : > { %p884_p6 = pneg %p883_p10 }
  0x25   : > { %p891_p4 = pnand %p890_p0, %p884_p6 }
  0x27   : > { %894 = shalt.err (!%p891_p4)
}
  0x28   : > { %s1043_s25 = smov 128   ;;  %s1044_s6 = smov 8  }
  0x29   : > { %792 = dma.hbm_to_vmem [thread:$0]  (!%p1145_p11), %s1344_s1, 1024, %s1138_s7, [#allocation7], %s1043_s25, %s1043_s25, %s1044_s6  }
  0x2a   : > { %s895_s14 = scalar_lea.hbm %s1346_s3, 2048 }
  0x2b   : > { %p896_p1 = scmp.ne.s32.totalorder %s1346_s3, %s895_s14  ;;  %p902_p10 = scmp.lt.u32.totalorder %s895_s14, %s1346_s3 }
  0x2d   : > { %p898_p4 = pnand %p896_p1, %p869_p13 }
  0x2f   : > { %p899_p6 = pneg %p898_p4 }
  0x31   : > { %p904_p3 = pnand %p902_p10, %p899_p6 }
  0x33   : > { %907 = shalt.err (!%p904_p3)
}
  0x34   : > { %s908_s7 = scalar_lea.vmem %s1149_s10, 2048  ;;  %p916_p12 = scmp.lt.s32.totalorder %s1149_s10, %s1149_s10 }
  0x35   : > { %p909_p5 = scmp.ne.s32.totalorder %s1149_s10, %s908_s7  ;;  %p917_p0 = scmp.lt.s32.totalorder %s908_s7, %s908_s7 }
  0x37   : > { %p911_p7 = pnand %p909_p5, %p869_p13  ;;  %p918_p1 = por %p917_p0, %p916_p12 }
  0x39   : > { %p912_p9 = pneg %p911_p7 }
  0x3b   : > { %p919_p4 = pnand %p918_p1, %p912_p9 }
  0x3d   : > { %922 = shalt.err (!%p919_p4)
}
  0x3e   : > { %795 = dma.hbm_to_vmem [thread:$0]  (!%p1145_p11), %s1346_s3, 2048, %s1149_s10, [#allocation7], %s1043_s25, %s1043_s25, %s1044_s6  }
  0x3f   : > { %s34_s12 = sadd.s32 1, %s1035_s22  ;;  %s41_s13 = sadd.s32 1, %s1027_s20 }
  0x40   : > { %p36_p13 = scmp.ge.s32.totalorder %s34_s12, 2  ;;  %p48_p6 = scmp.ne.s32.totalorder %s1027_s20, %s1023_s19 }
  0x41   : > { %p49_p10 = scmp.eq.s32.totalorder %s1039_s23, 0  ;;  %p806_p3 = scmp.lt.s32.totalorder %s1039_s23, 2 }
  0x42   : > { %s1372_s12 = smov (%p36_p13, %s34_s12), 0  ;;  %p1213_p7 = por %p1118_p2, %p48_p6 }
  0x43   : > { %p50_p5 = por %p49_p10, %p48_p6  ;;  %s38_s14 = ssub.s32 %s1035_s22, %s1372_s12 }
  0x44   : > { %s1359_s8 = scalar_select %p1213_p7, 1, 0 }
  0x45   : > { %s243_s15 = sand.u32 1, %s1027_s20   ;;  %p39_p9 = scmp.eq.s32.totalorder %s38_s14, 0 }
  0x46   : > { %s647_s10 = sshll.u32 %s243_s15, 3  ;;  %s648_s25 = sshll.u32 %s1035_s22, 7 }
  0x47   : > { %s1222_s6 = scalar_select %p39_p9, %s1027_s20, %s41_s13  }
  0x48   : > { %s1227_s24 = scalar_lea.hbm %s1343_s0, %s648_s25  ;;  %s247_s27 = scalar_lea.vmem [#allocation3], %s647_s10 }
  0x49   : > { %s254_s7 = sshll.u32 %s247_s27, 4  ;;  %p1231_p2 = pnand %p806_p3, %p50_p5  ;;  %s1235_s7 = int_to_ptr.vmem [resolvable:$true] %s254_s7 }
  0x4a   : > { %s244_s11 = scalar_lea.sflag [#allocation4], %s243_s15  ;;  %s923_s13 = scalar_lea.hbm %s1227_s24, 128 }
  0x4b   : > { %p924_p11 = scmp.ne.s32.totalorder %s1227_s24, %s923_s13  ;;  %p925_p12 = pneg %p1231_p2 }
  0x4c   : > { %s928_s25 = scalar_lea.hbm %s1343_s0, 256  ;;  %p929_p4 = scmp.lt.u32.totalorder %s1227_s24, %s1343_s0 }
  0x4d   : > { %p926_p0 = pnand %p925_p12, %p924_p11  ;;  %p930_p13 = scmp.lt.u32.totalorder %s928_s25, %s923_s13 }
  0x4e   : > { %p932_p10 = scmp.lt.u32.totalorder %s923_s13, %s1227_s24 }
  0x4f   : > { %p927_p1 = pneg %p926_p0  ;;  %p931_p6 = por %p930_p13, %p929_p4 }
  0x51   : > { %p933_p3 = por %p932_p10, %p931_p6 }
  0x53   : > { %p934_p5 = pnand %p933_p3, %p927_p1 }
  0x55   : > { %937 = shalt.err (!%p934_p5)
}
  0x56   : > { %s938_s15 = scalar_lea.vmem %s1235_s7, 128  ;;  %s1045_s27 = smov [#allocation3]  }
  0x57   : > { %p939_p9 = scmp.ne.s32.totalorder %s1235_s7, %s938_s15  ;;  %s943_s14 = sshll.u32 %s1045_s27, 4  ;;  %s944_s14 = int_to_ptr.vmem [resolvable:$false] %s943_s14 }
  0x58   : > { %s945_s10 = scalar_lea.vmem %s944_s14, 256  ;;  %p946_p7 = scmp.lt.s32.totalorder %s1235_s7, %s944_s14 }
  0x59   : > { %p941_p11 = pnand %p939_p9, %p925_p12  ;;  %p947_p4 = scmp.lt.s32.totalorder %s945_s10, %s938_s15 }
  0x5b   : > { %p942_p0 = pneg %p941_p11  ;;  %p948_p13 = por %p947_p4, %p946_p7 }
  0x5d   : > { %p949_p6 = pnand %p948_p13, %p942_p0 }
  0x5f   : > { %952 = shalt.err (!%p949_p6)
}
  0x60   : > { %799 = dma.hbm_to_vmem [thread:$0]  (!%p1231_p2), %s1227_s24, 128, %s1235_s7, %s244_s11  }
  0x61   : > { %263 = sbr.rel (%p1134_p8) target bundleno = 586 (0x24a), region = 40  ;;  %s1265_s13 = sand.u32 (!%p1134_p8), 1, %s1023_s19  }
  0x62   : > { %s650_s25 = sshll.u32 (!%p1134_p8), %s1265_s13, 3  ;;  %s266_s16 = scalar_lea.sflag (!%p1134_p8), [#allocation4], %s1265_s13 }
  0x63   : > { %s1271_s17 = scalar_lea.vmem (!%p1134_p8), [#allocation3], %s650_s25  ;;  %p1361_p7 = scmp.ne.s32.totalorder (!%p1134_p8), %s1355_s28, 0 }
  0x68   : > { %1006 = dma.done.wait (%p1361_p7), %s266_s16, 128  }
  0x69   : > { %1008 = vsyncadd (%p1361_p7), %s266_s16, 4294967168  ;;  %p1362_p2 = scmp.ne.s32.totalorder %s1353_s26, 0 }
  0x6b   : > { %1010 = dma.done.wait (%p1362_p2), [#allocation7], 3072  }
  0x6c   : > { %1012 = vsyncadd (%p1362_p2), [#allocation7], 4294964224  ;;  %v1046_v0 = vmov 0.0|0.0   ;;  %vm1047_vm0 = vmmov 0   ;;  %v1048_v1 = vmov 0.0   ;;  %v317_v2 = vld [vmem:[#allocation6] sm:$0xff] }
  0x6d   : > { %741 = vmatprep.subr.bf16.mxu0 %v1046_v0  ;;  %703 = vmatprep.mubr.msk.f32.mxu0 %vm1047_vm0, %v1048_v1  ;;  %v318_v3 = vld [vmem:[#allocation6 + $0x8] sm:$0xff]  ;;  %v319_v4 = vld [vmem:[#allocation6 + $0x10] sm:$0xff]  ;;  %v320_v6 = vld [vmem:[#allocation6 + $0x18] sm:$0xff]  ;;  %vm332_vm1 = vcmask 523264   ;;  %s658_s7 = sshll.u32 %s1031_s21, 7  ;;  %s306_s9 = scalar_lea.vmem [#allocation9], %s650_s25 }
  0x6e   : > { %753 = vmatprep.subr.bf16.mxu1 %v1046_v0  ;;  %738 = vmatprep.mubr.msk.f32.mxu1 %vm1047_vm0, %v1048_v1  ;;  %v742_v5 = vpack.c.bf16 %v318_v3, %v317_v2  ;;  %v745_v7 = vpack.c.bf16 %v320_v6, %v319_v4  ;;  %v412_v8 = vld [vmem:[#allocation8] sm:$0xff]  ;;  %v413_v9 = vld [vmem:[#allocation8 + $0x8] sm:$0xff]  ;;  %v414_v10 = vld [vmem:[#allocation8 + $0x10] sm:$0xff]  ;;  %s527_s11 = sshll.u32 %s306_s9, 4  ;;  %s1294_s14 = scalar_lea.hbm %s1348_s5, %s658_s7  ;;  %s1296_s11 = int_to_ptr.vmem [resolvable:$true] %s527_s11 }
  0x6f   : > { %v321_v11 = vld [vmem:[#allocation6 + $0x20] sm:$0xff]  ;;  %v322_v12 = vld [vmem:[#allocation6 + $0x28] sm:$0xff]  ;;  %v754_v13 = vpack.c.bf16 %v413_v9, %v412_v8  ;;  %v415_v14 = vld [vmem:[#allocation8 + $0x18] sm:$0xff]  ;;  %s514_s10 = scalar_lea.sflag [#allocation5], %s1265_s13  ;;  %s953_s16 = scalar_lea.vmem %s1296_s11, 128 }
  0x70   : > { %743 = vmatpush3.bf16.msra.mxu0 %v742_v5  ;;  %v757_v15 = vpack.c.bf16 %v415_v14, %v414_v10  ;;  %v748_v16 = vpack.c.bf16 %v322_v12, %v321_v11  ;;  %v416_v17 = vld [vmem:[#allocation8 + $0x20] sm:$0xff]  ;;  %v417_v18 = vld [vmem:[#allocation8 + $0x28] sm:$0xff]  ;;  %v323_v19 = vld [vmem:[#allocation6 + $0x30] sm:$0xff]  ;;  %p954_p8 = scmp.ne.s32.totalorder %s1296_s11, %s953_s16  ;;  %p1363_p12 = scmp.ne.s32.totalorder %s1359_s8, 0 }
  0x71   : > { %744 = vmatprep.subr.bf16.mxu0 %v1046_v0  ;;  %755 = vmatpush3.bf16.msra.mxu1 %v754_v13  ;;  %v324_v20 = vld [vmem:[#allocation6 + $0x38] sm:$0xff]  ;;  %v760_v21 = vpack.c.bf16 %v417_v18, %v416_v17  ;;  %v418_v24 = vld [vmem:[#allocation8 + $0x30] sm:$0xff]  ;;  %v420_v27 = vld [vmem:[#allocation8 + $0x40] sm:$0xff]  ;;  %s1049_s21 = smov [#allocation9]  }
  0x72   : > { %756 = vmatprep.subr.bf16.mxu1 %v1046_v0  ;;  %v751_v22 = vpack.c.bf16 %v324_v20, %v323_v19  ;;  %v316_v23 = vld [vmem:[%s1271_s17] sm:$0xff]  ;;  %v421_v28 = vld [vmem:[#allocation8 + $0x48] sm:$0xff]  ;;  %v424_v33 = vld [vmem:[#allocation8 + $0x60] sm:$0xff]  ;;  %p955_p1 = pnand %p954_p8, %p1363_p12  ;;  %s957_s25 = sshll.u32 %s1049_s21, 4  ;;  %s958_s25 = int_to_ptr.vmem [resolvable:$false] %s957_s25 }
  0x73   : > { %v419_v25 = vld [vmem:[#allocation8 + $0x38] sm:$0xff]  ;;  %v766_v29 = vpack.c.bf16 %v421_v28, %v420_v27  ;;  %v422_v30 = vld [vmem:[#allocation8 + $0x50] sm:$0xff]  ;;  %v425_v34 = vld [vmem:[#allocation8 + $0x68] sm:$0xff]  ;;  %s959_s17 = scalar_lea.vmem %s958_s25, 256  ;;  %p960_p3 = scmp.lt.s32.totalorder %s1296_s11, %s958_s25 }
  0x74   : > { %746 = vmatpush3.bf16.msra.mxu0 %v745_v7  ;;  %v763_v26 = vpack.c.bf16 %v419_v25, %v418_v24  ;;  %v423_v31 = vld [vmem:[#allocation8 + $0x58] sm:$0xff]  ;;  %v772_v35 = vpack.c.bf16 %v425_v34, %v424_v33  ;;  %v426_v36 = vld [vmem:[#allocation8 + $0x70] sm:$0xff]  ;;  %p956_p10 = pneg %p955_p1  ;;  %p961_p5 = scmp.lt.s32.totalorder %s959_s17, %s953_s16 }
  0x75   : > { %747 = vmatprep.subr.bf16.mxu0 %v1046_v0  ;;  %758 = vmatpush3.bf16.msra.mxu1 %v757_v15  ;;  %v769_v32 = vpack.c.bf16 %v423_v31, %v422_v30  ;;  %v427_v37 = vld [vmem:[#allocation8 + $0x78] sm:$0xff]  ;;  %v654_v39 = vld [vmem:[%s1345_s2] ss:$0 sm:$0xff] }
  0x76   : > { %759 = vmatprep.subr.bf16.mxu1 %v1046_v0  ;;  %v775_v38 = vpack.c.bf16 %v427_v37, %v426_v36  ;;  %v656_v48 = vld [vmem:[%s1347_s4] ss:$0 sm:$0xff]  ;;  %p962_p9 = por %p961_p5, %p960_p3 }
  0x78   : > { %749 = vmatpush3.bf16.msra.mxu0 %v748_v16  ;;  %p963_p11 = pnand %p962_p9, %p956_p10 }
  0x79   : > { %750 = vmatprep.subr.bf16.mxu0 %v1046_v0  ;;  %761 = vmatpush3.bf16.msra.mxu1 %v760_v21 }
  0x7a   : > { %762 = vmatprep.subr.bf16.mxu1 %v1046_v0 }
  0x7c   : > { %752 = vmatpush3.bf16.msra.mxu0 %v751_v22 }
  0x7d   : > { %764 = vmatpush3.bf16.msra.mxu1 %v763_v26 }
  0x7e   : > { %765 = vmatprep.subr.bf16.mxu1 %v1046_v0 }
  0x7f   : > { %704 = vmatmul.mubr.msk.f32.vlgmr.msra.gmra.mrb[0].mxu0 %vm332_vm1, %v316_v23 }
  0x81   : > { %767 = vmatpush3.bf16.msra.mxu1 %v766_v29 }
  0x82   : > { %768 = vmatprep.subr.bf16.mxu1 %v1046_v0 }
  0x85   : > { %770 = vmatpush3.bf16.msra.mxu1 %v769_v32 }
  0x86   : > { %771 = vmatprep.subr.bf16.mxu1 %v1046_v0 }
  0x89   : > { %773 = vmatpush3.bf16.msra.mxu1 %v772_v35 }
  0x8a   : > { %774 = vmatprep.subr.bf16.mxu1 %v1046_v0 }
  0x8d   : > { %776 = vmatpush3.bf16.msra.mxu1 %v775_v38 }
 0x152   : > { %v402_v40 = vpop.f32.mrb[0].mxu0 }
 0x153   : > { %v403_v41 = vadd.f32 %v654_v39, %v402_v40  ;;  %v705_v42 = vpop.f32.mrb[1].mxu0 }
 0x155   : > { %v407_v43 = vmul.f32 0.70710677, %v403_v41  ;;  %v406_v45 = vmul.f32 0.5, %v403_v41 }
 0x157   : > { %865 = verf.f32 %v407_v43 }
 0x161   : > { %v866_v44 = vpop.eup %865 }
 0x162   : > { %v409_v46 = vadd.f32 1.0, %v866_v44 }
 0x164   : > { %v410_v47 = vmul.f32 %v409_v46, %v406_v45 }
 0x166   : > { %739 = vmatmul.mubr.f32.vlgmr.msra.gmra.mrb[0].mxu1 %v410_v47 }
 0x239   : > { %v494_v49 = vpop.f32.mrb[0].mxu1 }
 0x23a   : > { %v511_v50 = vadd.f32 %v656_v48, %v494_v49  ;;  %v740_v51 = vpop.f32.mrb[1].mxu1 }
 0x23c   : > { %512 = vst [vmem:[%s306_s9] sm:$0xff] %v511_v50 }
 0x23d   : > { %966 = shalt.err (!%p963_p11)
}
 0x23e   : > { %s967_s13 = scalar_lea.hbm %s1294_s14, 128  ;;  %s971_s30 = scalar_lea.hbm %s1348_s5, 256 }
 0x23f   : > { %p968_p0 = scmp.ne.s32.totalorder %s1294_s14, %s967_s13  ;;  %p972_p6 = scmp.lt.u32.totalorder %s1294_s14, %s1348_s5 }
 0x240   : > { %p973_p7 = scmp.lt.u32.totalorder %s971_s30, %s967_s13  ;;  %p975_p8 = scmp.lt.u32.totalorder %s967_s13, %s1294_s14 }
 0x241   : > { %p969_p4 = pnand %p968_p0, %p1363_p12 }
 0x242   : > { %p974_p2 = por %p973_p7, %p972_p6 }
 0x243   : > { %p970_p13 = pneg %p969_p4 }
 0x244   : > { %p976_p1 = por %p975_p8, %p974_p2 }
 0x246   : > { %p977_p10 = pnand %p976_p1, %p970_p13 }
 0x248   : > { %980 = shalt.err (!%p977_p10)
}
 0x249   : > { %787 = dma.vmem_to_hbm [thread:$0]  (%p1363_p12), %s1296_s11, 128, %s1294_s14, %s514_s10  }
 0x24a PF: > { %s539_s9 = sand.u32 1, %s1019_s18   ;;  %p1364_p3 = scmp.ne.s32.totalorder %s1356_s29, 0 }
 0x24b   : > { %p1365_p5 = scmp.ge.s32.totalorder %s1039_s23, 2  ;;  %s540_s15 = scalar_lea.sflag [#allocation5], %s539_s9 }
 0x24d   : > { %p801_p9 = pnand %p1365_p5, %p1364_p3 }
 0x24f   : > { %1014 = dma.done.wait (!%p801_p9), %s540_s15, 128  }
 0x250   : > { %1016 = vsyncadd (!%p801_p9), %s540_s15, 4294967168  ;;  %s22_s23 = sadd.s32 1, %s1039_s23   ;;  %s1366_s18 = smov %s1023_s19 }
 0x251   : > { %p19_p11 = scmp.ge.s32.totalorder %s22_s23, 4   ;;  %s1367_s19 = smov %s1027_s20 }
 0x252   : > { %s1368_s20 = smov %s1222_s6  ;;  %s1369_s21 = smov %s1035_s22 }
 0x253   : > { %s1370_s22 = smov %s1372_s12  ;;  %21 = sbr.rel (!%p19_p11) target bundleno = 7 (0x7), region = 106 }
 0x25a   :  { %545 = vsyncpa [#allocation4], 1 }
 0x25b   :  { %547 = vsyncpa [#allocation4 + $0x1], 1 }
 0x25c   :  { %548 = vsyncpa [#allocation7], 1 }
 0x25d   :  { %549 = vsyncpa [#allocation5], 1 }
 0x25e   :  { %551 = vsyncpa [#allocation5 + $0x1], 1 }

// kernel: tpu_custom_call.1
= control target key start
LH: loop header
LB: loop body
LE: loop exit
PB: predicated region body
PF: predicated region fallthrough
CT: control target
= control target key end

     0   :  { %10 = vsyncpa [#allocation4], 0  ;;  %s1343_s0 = inlined_call_operand.hbm [shape: f32[16,64], index: 0, kind: input, shape index: {}]   ;;  %s1344_s1 = inlined_call_operand.hbm [shape: f32[64,128], index: 1, kind: input, shape index: {}]   ;;  %s1345_s2 = inlined_call_operand.vmem [shape: f32[1,128], index: 2, kind: input, shape index: {}]   ;;  %s1346_s3 = inlined_call_operand.hbm [shape: f32[128,128], index: 3, kind: input, shape index: {}]   ;;  %s1347_s4 = inlined_call_operand.vmem [shape: f32[1,128], index: 4, kind: input, shape index: {}]   ;;  %s1348_s5 = inlined_call_operand.hbm [shape: f32[16,128], index: 5, kind: output, shape index: {}]  }
   0x1   :  { %12 = vsyncpa [#allocation4 + $0x1], 0 }
   0x2   :  { %13 = vsyncpa [#allocation7], 0 }
   0x3   :  { %14 = vsyncpa [#allocation5], 0 }
   0x4   :  { %16 = vsyncpa [#allocation5 + $0x1], 0  ;;  %s1080_s18 = smov 0   ;;  %s1082_s19 = smov 0  }
   0x5   :  { %s1084_s20 = smov 0   ;;  %s1086_s21 = smov 0  }
   0x6   :  { %s1088_s22 = smov 0   ;;  %s1090_s23 = smov 0  }
   0x7 LB: > { %s640_s24 = sadd.s32 4294967295, %s1039_s23   ;;  %s641_s25 = sadd.s32 4294967294, %s1039_s23   ;;  %s1039_s23 = sphi %s1090_s23, %s22_s23   ;;  %s1035_s22 = sphi %s1088_s22, %s1370_s22   ;;  %s1031_s21 = sphi %s1086_s21, %s1369_s21   ;;  %s1027_s20 = sphi %s1084_s20, %s1368_s20   ;;  %s1023_s19 = sphi %s1082_s19, %s1367_s19   ;;  %s1019_s18 = sphi %s1080_s18, %s1366_s18  }
   0x8   : > { %p54_p0 = scmp.ne.s32.totalorder %s1023_s19, %s1019_s18  ;;  %p1114_p1 = scmp.eq.s32.totalorder %s640_s24, 0 }
   0x9   : > { %p1118_p2 = scmp.eq.s32.totalorder %s640_s24, 1  ;;  %p183_p3 = scmp.eq.s32.totalorder %s641_s25, 1 }
   0xa   : > { %s1353_s26 = scalar_select %p1114_p1, 1, 0 }
   0xb   : > { %p1124_p4 = por %p1114_p1, %p54_p0  ;;  %p642_p5 = scmp.ge.s32.totalorder %s1039_s23, 1 }
   0xc   : > { %p1129_p6 = por %p183_p3, %p54_p0  ;;  %p190_p7 = scmp.lt.s32.totalorder %s1039_s23, 3 }
   0xd   : > { %s1355_s28 = scalar_select %p1124_p4, 1, 0 }
   0xe   : > { %s1356_s29 = scalar_select %p1129_p6, 1, 0 }
   0xf   : > { %p1134_p8 = pnand %p642_p5, %p190_p7  ;;  %s1041_s6 = smov [#allocation6]  }
  0x10   : > { %s204_s7 = sshll.u32 %s1041_s6, 4  ;;  %s1042_s9 = smov [#allocation8]   ;;  %s1138_s7 = int_to_ptr.vmem [resolvable:$true] %s204_s7 }
  0x11   : > { %p789_p9 = pneg %p1134_p8  ;;  %s226_s10 = sshll.u32 %s1042_s9, 4  ;;  %s1149_s10 = int_to_ptr.vmem [resolvable:$true] %s226_s10 }
  0x12   : > { %s867_s13 = scalar_lea.hbm %s1344_s1, 1024 }
  0x13   : > { %p1145_p11 = pnand %p789_p9, %p1114_p1  ;;  %p868_p12 = scmp.ne.s32.totalorder %s1344_s1, %s867_s13 }
  0x14   : > { %p874_p5 = scmp.lt.u32.totalorder %s867_s13, %s1344_s1 }
  0x15   : > { %p869_p13 = pneg %p1145_p11 }
  0x17   : > { %p870_p0 = pnand %p869_p13, %p868_p12 }
  0x19   : > { %p871_p3 = pneg %p870_p0 }
  0x1b   : > { %p876_p7 = pnand %p874_p5, %p871_p3 }
  0x1d   : > { %879 = shalt.err (!%p876_p7)
}
  0x1e   : > { %s880_s24 = scalar_lea.vmem %s1138_s7, 1024  ;;  %p888_p1 = scmp.lt.s32.totalorder %s1138_s7, %s1138_s7 }
  0x1f   : > { %p881_p9 = scmp.ne.s32.totalorder %s1138_s7, %s880_s24  ;;  %p889_p12 = scmp.lt.s32.totalorder %s880_s24, %s880_s24 }
  0x21   : > { %p883_p10 = pnand %p881_p9, %p869_p13  ;;  %p890_p0 = por %p889_p12, %p888_p1 }
  0x23   : > { %p884_p6 = pneg %p883_p10 }
  0x25   : > { %p891_p4 = pnand %p890_p0, %p884_p6 }
  0x27   : > { %894 = shalt.err (!%p891_p4)
}
  0x28   : > { %s1043_s25 = smov 128   ;;  %s1044_s6 = smov 8  }
  0x29   : > { %792 = dma.hbm_to_vmem [thread:$0]  (!%p1145_p11), %s1344_s1, 1024, %s1138_s7, [#allocation7], %s1043_s25, %s1043_s25, %s1044_s6  }
  0x2a   : > { %s895_s14 = scalar_lea.hbm %s1346_s3, 2048 }
  0x2b   : > { %p896_p1 = scmp.ne.s32.totalorder %s1346_s3, %s895_s14  ;;  %p902_p10 = scmp.lt.u32.totalorder %s895_s14, %s1346_s3 }
  0x2d   : > { %p898_p4 = pnand %p896_p1, %p869_p13 }
  0x2f   : > { %p899_p6 = pneg %p898_p4 }
  0x31   : > { %p904_p3 = pnand %p902_p10, %p899_p6 }
  0x33   : > { %907 = shalt.err (!%p904_p3)
}
  0x34   : > { %s908_s7 = scalar_lea.vmem %s1149_s10, 2048  ;;  %p916_p12 = scmp.lt.s32.totalorder %s1149_s10, %s1149_s10 }
  0x35   : > { %p909_p5 = scmp.ne.s32.totalorder %s1149_s10, %s908_s7  ;;  %p917_p0 = scmp.lt.s32.totalorder %s908_s7, %s908_s7 }
  0x37   : > { %p911_p7 = pnand %p909_p5, %p869_p13  ;;  %p918_p1 = por %p917_p0, %p916_p12 }
  0x39   : > { %p912_p9 = pneg %p911_p7 }
  0x3b   : > { %p919_p4 = pnand %p918_p1, %p912_p9 }
  0x3d   : > { %922 = shalt.err (!%p919_p4)
}
  0x3e   : > { %795 = dma.hbm_to_vmem [thread:$0]  (!%p1145_p11), %s1346_s3, 2048, %s1149_s10, [#allocation7], %s1043_s25, %s1043_s25, %s1044_s6  }
  0x3f   : > { %s34_s12 = sadd.s32 1, %s1035_s22  ;;  %s41_s13 = sadd.s32 1, %s1027_s20 }
  0x40   : > { %p36_p13 = scmp.ge.s32.totalorder %s34_s12, 2  ;;  %p48_p6 = scmp.ne.s32.totalorder %s1027_s20, %s1023_s19 }
  0x41   : > { %p49_p10 = scmp.eq.s32.totalorder %s1039_s23, 0  ;;  %p806_p3 = scmp.lt.s32.totalorder %s1039_s23, 2 }
  0x42   : > { %s1372_s12 = smov (%p36_p13, %s34_s12), 0  ;;  %p1213_p7 = por %p1118_p2, %p48_p6 }
  0x43   : > { %p50_p5 = por %p49_p10, %p48_p6  ;;  %s38_s14 = ssub.s32 %s1035_s22, %s1372_s12 }
  0x44   : > { %s1359_s8 = scalar_select %p1213_p7, 1, 0 }
  0x45   : > { %s243_s15 = sand.u32 1, %s1027_s20   ;;  %p39_p9 = scmp.eq.s32.totalorder %s38_s14, 0 }
  0x46   : > { %s647_s10 = sshll.u32 %s243_s15, 3  ;;  %s648_s25 = sshll.u32 %s1035_s22, 7 }
  0x47   : > { %s1222_s6 = scalar_select %p39_p9, %s1027_s20, %s41_s13  }
  0x48   : > { %s1227_s24 = scalar_lea.hbm %s1343_s0, %s648_s25  ;;  %s247_s27 = scalar_lea.vmem [#allocation3], %s647_s10 }
  0x49   : > { %s254_s7 = sshll.u32 %s247_s27, 4  ;;  %p1231_p2 = pnand %p806_p3, %p50_p5  ;;  %s1235_s7 = int_to_ptr.vmem [resolvable:$true] %s254_s7 }
  0x4a   : > { %s244_s11 = scalar_lea.sflag [#allocation4], %s243_s15  ;;  %s923_s13 = scalar_lea.hbm %s1227_s24, 128 }
  0x4b   : > { %p924_p11 = scmp.ne.s32.totalorder %s1227_s24, %s923_s13  ;;  %p925_p12 = pneg %p1231_p2 }
  0x4c   : > { %s928_s25 = scalar_lea.hbm %s1343_s0, 256  ;;  %p929_p4 = scmp.lt.u32.totalorder %s1227_s24, %s1343_s0 }
  0x4d   : > { %p926_p0 = pnand %p925_p12, %p924_p11  ;;  %p930_p13 = scmp.lt.u32.totalorder %s928_s25, %s923_s13 }
  0x4e   : > { %p932_p10 = scmp.lt.u32.totalorder %s923_s13, %s1227_s24 }
  0x4f   : > { %p927_p1 = pneg %p926_p0  ;;  %p931_p6 = por %p930_p13, %p929_p4 }
  0x51   : > { %p933_p3 = por %p932_p10, %p931_p6 }
  0x53   : > { %p934_p5 = pnand %p933_p3, %p927_p1 }
  0x55   : > { %937 = shalt.err (!%p934_p5)
}
  0x56   : > { %s938_s15 = scalar_lea.vmem %s1235_s7, 128  ;;  %s1045_s27 = smov [#allocation3]  }
  0x57   : > { %p939_p9 = scmp.ne.s32.totalorder %s1235_s7, %s938_s15  ;;  %s943_s14 = sshll.u32 %s1045_s27, 4  ;;  %s944_s14 = int_to_ptr.vmem [resolvable:$false] %s943_s14 }
  0x58   : > { %s945_s10 = scalar_lea.vmem %s944_s14, 256  ;;  %p946_p7 = scmp.lt.s32.totalorder %s1235_s7, %s944_s14 }
  0x59   : > { %p941_p11 = pnand %p939_p9, %p925_p12  ;;  %p947_p4 = scmp.lt.s32.totalorder %s945_s10, %s938_s15 }
  0x5b   : > { %p942_p0 = pneg %p941_p11  ;;  %p948_p13 = por %p947_p4, %p946_p7 }
  0x5d   : > { %p949_p6 = pnand %p948_p13, %p942_p0 }
  0x5f   : > { %952 = shalt.err (!%p949_p6)
}
  0x60   : > { %799 = dma.hbm_to_vmem [thread:$0]  (!%p1231_p2), %s1227_s24, 128, %s1235_s7, %s244_s11  }
  0x61   : > { %263 = sbr.rel (%p1134_p8) target bundleno = 586 (0x24a), region = 40  ;;  %s1265_s13 = sand.u32 (!%p1134_p8), 1, %s1023_s19  }
  0x62   : > { %s650_s25 = sshll.u32 (!%p1134_p8), %s1265_s13, 3  ;;  %s266_s16 = scalar_lea.sflag (!%p1134_p8), [#allocation4], %s1265_s13 }
  0x63   : > { %s1271_s17 = scalar_lea.vmem (!%p1134_p8), [#allocation3], %s650_s25  ;;  %p1361_p7 = scmp.ne.s32.totalorder (!%p1134_p8), %s1355_s28, 0 }
  0x68   : > { %1006 = dma.done.wait (%p1361_p7), %s266_s16, 128  }
  0x69   : > { %1008 = vsyncadd (%p1361_p7), %s266_s16, 4294967168  ;;  %p1362_p2 = scmp.ne.s32.totalorder %s1353_s26, 0 }
  0x6b   : > { %1010 = dma.done.wait (%p1362_p2), [#allocation7], 3072  }
  0x6c   : > { %1012 = vsyncadd (%p1362_p2), [#allocation7], 4294964224  ;;  %v1046_v0 = vmov 0.0|0.0   ;;  %vm1047_vm0 = vmmov 0   ;;  %v1048_v1 = vmov 0.0   ;;  %v317_v2 = vld [vmem:[#allocation6] sm:$0xff] }
  0x6d   : > { %741 = vmatprep.subr.bf16.mxu0 %v1046_v0  ;;  %703 = vmatprep.mubr.msk.f32.mxu0 %vm1047_vm0, %v1048_v1  ;;  %v318_v3 = vld [vmem:[#allocation6 + $0x8] sm:$0xff]  ;;  %v319_v4 = vld [vmem:[#allocation6 + $0x10] sm:$0xff]  ;;  %v320_v6 = vld [vmem:[#allocation6 + $0x18] sm:$0xff]  ;;  %vm332_vm1 = vcmask 523264   ;;  %s658_s7 = sshll.u32 %s1031_s21, 7  ;;  %s306_s9 = scalar_lea.vmem [#allocation9], %s650_s25 }
  0x6e   : > { %753 = vmatprep.subr.bf16.mxu1 %v1046_v0  ;;  %738 = vmatprep.mubr.msk.f32.mxu1 %vm1047_vm0, %v1048_v1  ;;  %v742_v5 = vpack.c.bf16 %v318_v3, %v317_v2  ;;  %v745_v7 = vpack.c.bf16 %v320_v6, %v319_v4  ;;  %v412_v8 = vld [vmem:[#allocation8] sm:$0xff]  ;;  %v413_v9 = vld [vmem:[#allocation8 + $0x8] sm:$0xff]  ;;  %v414_v10 = vld [vmem:[#allocation8 + $0x10] sm:$0xff]  ;;  %s527_s11 = sshll.u32 %s306_s9, 4  ;;  %s1294_s14 = scalar_lea.hbm %s1348_s5, %s658_s7  ;;  %s1296_s11 = int_to_ptr.vmem [resolvable:$true] %s527_s11 }
  0x6f   : > { %v321_v11 = vld [vmem:[#allocation6 + $0x20] sm:$0xff]  ;;  %v322_v12 = vld [vmem:[#allocation6 + $0x28] sm:$0xff]  ;;  %v754_v13 = vpack.c.bf16 %v413_v9, %v412_v8  ;;  %v415_v14 = vld [vmem:[#allocation8 + $0x18] sm:$0xff]  ;;  %s514_s10 = scalar_lea.sflag [#allocation5], %s1265_s13  ;;  %s953_s16 = scalar_lea.vmem %s1296_s11, 128 }
  0x70   : > { %743 = vmatpush3.bf16.msra.mxu0 %v742_v5  ;;  %v757_v15 = vpack.c.bf16 %v415_v14, %v414_v10  ;;  %v748_v16 = vpack.c.bf16 %v322_v12, %v321_v11  ;;  %v416_v17 = vld [vmem:[#allocation8 + $0x20] sm:$0xff]  ;;  %v417_v18 = vld [vmem:[#allocation8 + $0x28] sm:$0xff]  ;;  %v323_v19 = vld [vmem:[#allocation6 + $0x30] sm:$0xff]  ;;  %p954_p8 = scmp.ne.s32.totalorder %s1296_s11, %s953_s16  ;;  %p1363_p12 = scmp.ne.s32.totalorder %s1359_s8, 0 }
  0x71   : > { %744 = vmatprep.subr.bf16.mxu0 %v1046_v0  ;;  %755 = vmatpush3.bf16.msra.mxu1 %v754_v13  ;;  %v324_v20 = vld [vmem:[#allocation6 + $0x38] sm:$0xff]  ;;  %v760_v21 = vpack.c.bf16 %v417_v18, %v416_v17  ;;  %v418_v24 = vld [vmem:[#allocation8 + $0x30] sm:$0xff]  ;;  %v420_v27 = vld [vmem:[#allocation8 + $0x40] sm:$0xff]  ;;  %s1049_s21 = smov [#allocation9]  }
  0x72   : > { %756 = vmatprep.subr.bf16.mxu1 %v1046_v0  ;;  %v751_v22 = vpack.c.bf16 %v324_v20, %v323_v19  ;;  %v316_v23 = vld [vmem:[%s1271_s17] sm:$0xff]  ;;  %v421_v28 = vld [vmem:[#allocation8 + $0x48] sm:$0xff]  ;;  %v424_v33 = vld [vmem:[#allocation8 + $0x60] sm:$0xff]  ;;  %p955_p1 = pnand %p954_p8, %p1363_p12  ;;  %s957_s25 = sshll.u32 %s1049_s21, 4  ;;  %s958_s25 = int_to_ptr.vmem [resolvable:$false] %s957_s25 }
  0x73   : > { %v419_v25 = vld [vmem:[#allocation8 + $0x38] sm:$0xff]  ;;  %v766_v29 = vpack.c.bf16 %v421_v28, %v420_v27  ;;  %v422_v30 = vld [vmem:[#allocation8 + $0x50] sm:$0xff]  ;;  %v425_v34 = vld [vmem:[#allocation8 + $0x68] sm:$0xff]  ;;  %s959_s17 = scalar_lea.vmem %s958_s25, 256  ;;  %p960_p3 = scmp.lt.s32.totalorder %s1296_s11, %s958_s25 }
  0x74   : > { %746 = vmatpush3.bf16.msra.mxu0 %v745_v7  ;;  %v763_v26 = vpack.c.bf16 %v419_v25, %v418_v24  ;;  %v423_v31 = vld [vmem:[#allocation8 + $0x58] sm:$0xff]  ;;  %v772_v35 = vpack.c.bf16 %v425_v34, %v424_v33  ;;  %v426_v36 = vld [vmem:[#allocation8 + $0x70] sm:$0xff]  ;;  %p956_p10 = pneg %p955_p1  ;;  %p961_p5 = scmp.lt.s32.totalorder %s959_s17, %s953_s16 }
  0x75   : > { %747 = vmatprep.subr.bf16.mxu0 %v1046_v0  ;;  %758 = vmatpush3.bf16.msra.mxu1 %v757_v15  ;;  %v769_v32 = vpack.c.bf16 %v423_v31, %v422_v30  ;;  %v427_v37 = vld [vmem:[#allocation8 + $0x78] sm:$0xff]  ;;  %v654_v39 = vld [vmem:[%s1345_s2] ss:$0 sm:$0xff] }
  0x76   : > { %759 = vmatprep.subr.bf16.mxu1 %v1046_v0  ;;  %v775_v38 = vpack.c.bf16 %v427_v37, %v426_v36  ;;  %v656_v48 = vld [vmem:[%s1347_s4] ss:$0 sm:$0xff]  ;;  %p962_p9 = por %p961_p5, %p960_p3 }
  0x78   : > { %749 = vmatpush3.bf16.msra.mxu0 %v748_v16  ;;  %p963_p11 = pnand %p962_p9, %p956_p10 }
  0x79   : > { %750 = vmatprep.subr.bf16.mxu0 %v1046_v0  ;;  %761 = vmatpush3.bf16.msra.mxu1 %v760_v21 }
  0x7a   : > { %762 = vmatprep.subr.bf16.mxu1 %v1046_v0 }
  0x7c   : > { %752 = vmatpush3.bf16.msra.mxu0 %v751_v22 }
  0x7d   : > { %764 = vmatpush3.bf16.msra.mxu1 %v763_v26 }
  0x7e   : > { %765 = vmatprep.subr.bf16.mxu1 %v1046_v0 }
  0x7f   : > { %704 = vmatmul.mubr.msk.f32.vlgmr.msra.gmra.mrb[0].mxu0 %vm332_vm1, %v316_v23 }
  0x81   : > { %767 = vmatpush3.bf16.msra.mxu1 %v766_v29 }
  0x82   : > { %768 = vmatprep.subr.bf16.mxu1 %v1046_v0 }
  0x85   : > { %770 = vmatpush3.bf16.msra.mxu1 %v769_v32 }
  0x86   : > { %771 = vmatprep.subr.bf16.mxu1 %v1046_v0 }
  0x89   : > { %773 = vmatpush3.bf16.msra.mxu1 %v772_v35 }
  0x8a   : > { %774 = vmatprep.subr.bf16.mxu1 %v1046_v0 }
  0x8d   : > { %776 = vmatpush3.bf16.msra.mxu1 %v775_v38 }
 0x152   : > { %v402_v40 = vpop.f32.mrb[0].mxu0 }
 0x153   : > { %v403_v41 = vadd.f32 %v654_v39, %v402_v40  ;;  %v705_v42 = vpop.f32.mrb[1].mxu0 }
 0x155   : > { %v407_v43 = vmul.f32 0.70710677, %v403_v41  ;;  %v406_v45 = vmul.f32 0.5, %v403_v41 }
 0x157   : > { %865 = verf.f32 %v407_v43 }
 0x161   : > { %v866_v44 = vpop.eup %865 }
 0x162   : > { %v409_v46 = vadd.f32 1.0, %v866_v44 }
 0x164   : > { %v410_v47 = vmul.f32 %v409_v46, %v406_v45 }
 0x166   : > { %739 = vmatmul.mubr.f32.vlgmr.msra.gmra.mrb[0].mxu1 %v410_v47 }
 0x239   : > { %v494_v49 = vpop.f32.mrb[0].mxu1 }
 0x23a   : > { %v511_v50 = vadd.f32 %v656_v48, %v494_v49  ;;  %v740_v51 = vpop.f32.mrb[1].mxu1 }
 0x23c   : > { %512 = vst [vmem:[%s306_s9] sm:$0xff] %v511_v50 }
 0x23d   : > { %966 = shalt.err (!%p963_p11)
}
 0x23e   : > { %s967_s13 = scalar_lea.hbm %s1294_s14, 128  ;;  %s971_s30 = scalar_lea.hbm %s1348_s5, 256 }
 0x23f   : > { %p968_p0 = scmp.ne.s32.totalorder %s1294_s14, %s967_s13  ;;  %p972_p6 = scmp.lt.u32.totalorder %s1294_s14, %s1348_s5 }
 0x240   : > { %p973_p7 = scmp.lt.u32.totalorder %s971_s30, %s967_s13  ;;  %p975_p8 = scmp.lt.u32.totalorder %s967_s13, %s1294_s14 }
 0x241   : > { %p969_p4 = pnand %p968_p0, %p1363_p12 }
 0x242   : > { %p974_p2 = por %p973_p7, %p972_p6 }
 0x243   : > { %p970_p13 = pneg %p969_p4 }
 0x244   : > { %p976_p1 = por %p975_p8, %p974_p2 }
 0x246   : > { %p977_p10 = pnand %p976_p1, %p970_p13 }
 0x248   : > { %980 = shalt.err (!%p977_p10)
}
 0x249   : > { %787 = dma.vmem_to_hbm [thread:$0]  (%p1363_p12), %s1296_s11, 128, %s1294_s14, %s514_s10  }
 0x24a PF: > { %s539_s9 = sand.u32 1, %s1019_s18   ;;  %p1364_p3 = scmp.ne.s32.totalorder %s1356_s29, 0 }
 0x24b   : > { %p1365_p5 = scmp.ge.s32.totalorder %s1039_s23, 2  ;;  %s540_s15 = scalar_lea.sflag [#allocation5], %s539_s9 }
 0x24d   : > { %p801_p9 = pnand %p1365_p5, %p1364_p3 }
 0x24f   : > { %1014 = dma.done.wait (!%p801_p9), %s540_s15, 128  }
 0x250   : > { %1016 = vsyncadd (!%p801_p9), %s540_s15, 4294967168  ;;  %s22_s23 = sadd.s32 1, %s1039_s23   ;;  %s1366_s18 = smov %s1023_s19 }
 0x251   : > { %p19_p11 = scmp.ge.s32.totalorder %s22_s23, 4   ;;  %s1367_s19 = smov %s1027_s20 }
 0x252   : > { %s1368_s20 = smov %s1222_s6  ;;  %s1369_s21 = smov %s1035_s22 }
 0x253   : > { %s1370_s22 = smov %s1372_s12  ;;  %21 = sbr.rel (!%p19_p11) target bundleno = 7 (0x7), region = 106 }
 0x25a   :  { %545 = vsyncpa [#allocation4], 1 }
 0x25b   :  { %547 = vsyncpa [#allocation4 + $0x1], 1 }
 0x25c   :  { %548 = vsyncpa [#allocation7], 1 }
 0x25d   :  { %549 = vsyncpa [#allocation5], 1 }
 0x25e   :  { %551 = vsyncpa [#allocation5 + $0x1], 1 }

</bundles_post_ra>
